<compile_context>
chip_gen: v7x
topology: tpu7x:2x2x1
jax: 0.10.0
libtpu: 0.0.40
codegen_flags: <defaults>
</compile_context>

<pallas_src>
import jax
import jax.numpy as jnp
from jax.experimental import pallas as pl
from jax.experimental.pallas import tpu as pltpu

_LANES = 128
_MAX_BLOCK_ROWS = 2048   # (2048, 128) f32 block = 1 MiB per stream


def _round_up(x, m):
    return (x + m - 1) // m * m


def _make_mse_kernel(n_preds, block_rows, n_valid_rows, needs_mask, inv_n):
    """Build kernel computing sum_p mean((pred_p - target)^2) into out[0,0]."""

    def kernel(*refs):
        pred_refs = refs[:n_preds]
        targ_ref = refs[n_preds]
        out_ref = refs[n_preds + 1]
        acc_refs = refs[n_preds + 2:]

        step = pl.program_id(0)

        @pl.when(step == 0)
        def _init():
            for acc in acc_refs:
                acc[...] = jnp.zeros_like(acc)

        targ = targ_ref[...].astype(jnp.float32)

        if needs_mask:
            row_ids = step * block_rows + jax.lax.broadcasted_iota(
                jnp.int32, (block_rows, _LANES), 0)
            valid = row_ids < n_valid_rows

        for p_ref, acc in zip(pred_refs, acc_refs):
            d = p_ref[...].astype(jnp.float32) - targ
            sq = d * d
            if needs_mask:
                sq = jnp.where(valid, sq, jnp.float32(0.0))
            acc[...] += sq

        @pl.when(step == pl.num_programs(0) - 1)
        def _finalize():
            total = jnp.float32(0.0)
            for acc in acc_refs:
                total = total + jnp.sum(acc[...])
            out_ref[0, 0] = total * jnp.float32(inv_n)

    return kernel


def _to_rows128(x):
    """Flatten to (rows, 128); zero-pad only if size % 128 != 0 (zeros add 0 SSE)."""
    flat = x.reshape(-1)
    pad = (-flat.size) % _LANES
    if pad:
        flat = jnp.pad(flat, (0, pad))
    return flat.reshape(-1, _LANES)


def _mse_loss_pallas(preds, targets):
    """sum_p mean((preds[p] - targets)^2), fused into one Pallas call."""
    n = targets.size
    for p in preds:
        assert p.shape == targets.shape, (p.shape, targets.shape)

    targ2d = _to_rows128(targets)
    pred2ds = tuple(_to_rows128(p) for p in preds)

    rows = targ2d.shape[0]
    block_rows = min(_MAX_BLOCK_ROWS, _round_up(rows, 8))
    num_blocks = pl.cdiv(rows, block_rows)
    needs_mask = (num_blocks * block_rows) != rows
    n_preds = len(preds)

    kernel = _make_mse_kernel(n_preds, block_rows, rows, needs_mask, 1.0 / n)
    spec = pl.BlockSpec((block_rows, _LANES), lambda i: (i, 0))

    out = pl.pallas_call(
        kernel,
        out_shape=jax.ShapeDtypeStruct((1, 1), jnp.float32),
        grid=(num_blocks,),
        in_specs=[spec] * (n_preds + 1),
        out_specs=pl.BlockSpec(memory_space=pltpu.SMEM),
        scratch_shapes=[pltpu.VMEM((block_rows, _LANES), jnp.float32)] * n_preds,
        compiler_params=pltpu.CompilerParams(
            dimension_semantics=("arbitrary",)),
    )(*pred2ds, targ2d)
    return out[0, 0]


@jax.jit
def _mse_loss_jit(preds, targets):
    return _mse_loss_pallas(preds, targets)


def mse_loss_forward(inputs, targets):
    """Port of models/nerf.py::MSELoss.forward.

    inputs: dict with 'rgb_coarse' (and optionally 'rgb_fine'), each (N, 3).
    targets: (N, 3). Returns a scalar float32 loss.
    """
    if 'rgb_fine' in inputs:
        preds = (inputs['rgb_coarse'], inputs['rgb_fine'])
    else:
        preds = (inputs['rgb_coarse'],)
    return _mse_loss_jit(preds, targets)


if __name__ == "__main__":
    key = jax.random.PRNGKey(0)
    k1, k2, k3 = jax.random.split(key, 3)

    # Small NeRF ray batch, lane-aligned case (256*3 = 768 = 6*128).
    n_rays = 256
    rgb_coarse = jax.random.uniform(k1, (n_rays, 3), dtype=jnp.float32)
    rgb_fine = jax.random.uniform(k2, (n_rays, 3), dtype=jnp.float32)
    targets = jax.random.uniform(k3, (n_rays, 3), dtype=jnp.float32)

    inputs = {'rgb_coarse': rgb_coarse, 'rgb_fine': rgb_fine}
    loss = jax.block_until_ready(mse_loss_forward(inputs, targets))
    ref = jnp.mean((rgb_coarse - targets) ** 2) + jnp.mean((rgb_fine - targets) ** 2)
    assert jnp.allclose(loss, ref, rtol=1e-5, atol=1e-6), (loss, ref)

    # Coarse-only path (no 'rgb_fine').
    loss_c = jax.block_until_ready(
        mse_loss_forward({'rgb_coarse': rgb_coarse}, targets))
    ref_c = jnp.mean((rgb_coarse - targets) ** 2)
    assert jnp.allclose(loss_c, ref_c, rtol=1e-5, atol=1e-6), (loss_c, ref_c)

    # Ragged case (100*3 = 300 elements): exercises pad-to-128 + in-kernel
    # tail-row masking.
    k4, k5, k6 = jax.random.split(jax.random.PRNGKey(0), 3)
    rc = jax.random.uniform(k4, (100, 3), dtype=jnp.float32)
    rf = jax.random.uniform(k5, (100, 3), dtype=jnp.float32)
    tg = jax.random.uniform(k6, (100, 3), dtype=jnp.float32)
    loss_r = jax.block_until_ready(
        mse_loss_forward({'rgb_coarse': rc, 'rgb_fine': rf}, tg))
    ref_r = jnp.mean((rc - tg) ** 2) + jnp.mean((rf - tg) ** 2)
    assert jnp.allclose(loss_r, ref_r, rtol=1e-5, atol=1e-6), (loss_r, ref_r)

    print("KERNEL_OK")
</pallas_src>

<mosaic_0001>
module attributes {stable_mosaic.version = 11 : i64} {
  func.func @kernel(%arg0: i32, %arg1: memref<8x128xf32, #tpu.memory_space<vmem>>, %arg2: memref<8x128xf32, #tpu.memory_space<vmem>>, %arg3: memref<8x128xf32, #tpu.memory_space<vmem>>, %arg4: memref<1x1xf32, #tpu.memory_space<smem>>, %arg5: memref<8x128xf32, #tpu.memory_space<vmem>>, %arg6: memref<8x128xf32, #tpu.memory_space<vmem>>) attributes {dimension_semantics = [#tpu.dimension_semantics<arbitrary>], iteration_bounds = array<i64: 1>, scalar_prefetch = 0 : i64, scratch_operands = 2 : i64, tpu.core_type = #tpu.core_type<tc>, window_params = [{transform_indices = @transform_0, window_bounds = array<i64: 8, 128>}, {transform_indices = @transform_1, window_bounds = array<i64: 8, 128>}, {transform_indices = @transform_2, window_bounds = array<i64: 8, 128>}, {transform_indices = @transform_3, window_bounds = array<i64: 1, 1>}]} {
    %c0_i32 = arith.constant 0 : i32
    %0 = arith.cmpi eq, %arg0, %c0_i32 : i32
    %1 = arith.extui %0 : i1 to i32
    %c0_i32_0 = arith.constant 0 : i32
    %2 = arith.cmpi ne, %1, %c0_i32_0 : i32
    scf.if %2 {
      %cst_17 = arith.constant 0.000000e+00 : f32
      %29 = vector.broadcast %cst_17 : f32 to vector<8x128xf32>
      %c0_18 = arith.constant 0 : index
      %c0_19 = arith.constant 0 : index
      %30 = vector.load %arg5[%c0_18, %c0_19] : memref<8x128xf32, #tpu.memory_space<vmem>>, vector<8x128xf32>
      tpu.vector_store %arg5[%c0_18, %c0_19], %29 {strides = array<i32>} : memref<8x128xf32, #tpu.memory_space<vmem>>, vector<8x128xf32>,
      %cst_20 = arith.constant 0.000000e+00 : f32
      %31 = vector.broadcast %cst_20 : f32 to vector<8x128xf32>
      %c0_21 = arith.constant 0 : index
      %c0_22 = arith.constant 0 : index
      %32 = vector.load %arg6[%c0_21, %c0_22] : memref<8x128xf32, #tpu.memory_space<vmem>>, vector<8x128xf32>
      tpu.vector_store %arg6[%c0_21, %c0_22], %31 {strides = array<i32>} : memref<8x128xf32, #tpu.memory_space<vmem>>, vector<8x128xf32>,
    } else {
    }
    %c0 = arith.constant 0 : index
    %c0_1 = arith.constant 0 : index
    %3 = vector.load %arg3[%c0, %c0_1] : memref<8x128xf32, #tpu.memory_space<vmem>>, vector<8x128xf32>
    %c8_i32 = arith.constant 8 : i32
    %4 = arith.muli %arg0, %c8_i32 : i32
    %5 = tpu.iota {dimensions = array<i32: 0>} : vector<8x128xi32>
    %6 = vector.broadcast %4 : i32 to vector<8x128xi32>
    %7 = arith.addi %6, %5 : vector<8x128xi32>
    %c6_i32 = arith.constant 6 : i32
    %8 = vector.broadcast %c6_i32 : i32 to vector<8x128xi32>
    %9 = arith.cmpi slt, %7, %8 : vector<8x128xi32>
    %c0_2 = arith.constant 0 : index
    %c0_3 = arith.constant 0 : index
    %10 = vector.load %arg1[%c0_2, %c0_3] : memref<8x128xf32, #tpu.memory_space<vmem>>, vector<8x128xf32>
    %11 = arith.subf %10, %3 : vector<8x128xf32>
    %12 = arith.mulf %11, %11 : vector<8x128xf32>
    %cst = arith.constant 0.000000e+00 : f32
    %13 = vector.broadcast %cst : f32 to vector<8x128xf32>
    %14 = arith.select %9, %12, %13 : vector<8x128xi1>, vector<8x128xf32>
    %c0_4 = arith.constant 0 : index
    %c0_5 = arith.constant 0 : index
    %15 = vector.load %arg5[%c0_4, %c0_5] : memref<8x128xf32, #tpu.memory_space<vmem>>, vector<8x128xf32>
    %16 = arith.addf %15, %14 : vector<8x128xf32>
    %c0_6 = arith.constant 0 : index
    %c0_7 = arith.constant 0 : index
    %17 = vector.load %arg5[%c0_6, %c0_7] : memref<8x128xf32, #tpu.memory_space<vmem>>, vector<8x128xf32>
    tpu.vector_store %arg5[%c0_6, %c0_7], %16 {strides = array<i32>} : memref<8x128xf32, #tpu.memory_space<vmem>>, vector<8x128xf32>,
    %c0_8 = arith.constant 0 : index
    %c0_9 = arith.constant 0 : index
    %18 = vector.load %arg2[%c0_8, %c0_9] : memref<8x128xf32, #tpu.memory_space<vmem>>, vector<8x128xf32>
    %19 = arith.subf %18, %3 : vector<8x128xf32>
    %20 = arith.mulf %19, %19 : vector<8x128xf32>
    %cst_10 = arith.constant 0.000000e+00 : f32
    %21 = vector.broadcast %cst_10 : f32 to vector<8x128xf32>
    %22 = arith.select %9, %20, %21 : vector<8x128xi1>, vector<8x128xf32>
    %c0_11 = arith.constant 0 : index
    %c0_12 = arith.constant 0 : index
    %23 = vector.load %arg6[%c0_11, %c0_12] : memref<8x128xf32, #tpu.memory_space<vmem>>, vector<8x128xf32>
    %24 = arith.addf %23, %22 : vector<8x128xf32>
    %c0_13 = arith.constant 0 : index
    %c0_14 = arith.constant 0 : index
    %25 = vector.load %arg6[%c0_13, %c0_14] : memref<8x128xf32, #tpu.memory_space<vmem>>, vector<8x128xf32>
    tpu.vector_store %arg6[%c0_13, %c0_14], %24 {strides = array<i32>} : memref<8x128xf32, #tpu.memory_space<vmem>>, vector<8x128xf32>,
    %c0_i32_15 = arith.constant 0 : i32
    %26 = arith.cmpi eq, %arg0, %c0_i32_15 : i32
    %27 = arith.extui %26 : i1 to i32
    %c0_i32_16 = arith.constant 0 : i32
    %28 = arith.cmpi ne, %27, %c0_i32_16 : i32
    scf.if %28 {
      %c0_17 = arith.constant 0 : index
      %c0_18 = arith.constant 0 : index
      %29 = vector.load %arg5[%c0_17, %c0_18] : memref<8x128xf32, #tpu.memory_space<vmem>>, vector<8x128xf32>
      %30 = vector.shape_cast %29 : vector<8x128xf32> to vector<1x8x128xf32>
      %cst_19 = arith.constant dense<0.000000e+00> : vector<1xf32>
      %31 = vector.multi_reduction <add>, %30, %cst_19 [1, 2] : vector<1x8x128xf32> to vector<1xf32>
      %32 = vector.shape_cast %31 : vector<1xf32> to vector<1x1x1xf32>
      %33 = vector.extract %32[0, 0, 0] : f32 from vector<1x1x1xf32>
      %cst_20 = arith.constant 0.000000e+00 : f32
      %34 = arith.addf %cst_20, %33 : f32
      %c0_21 = arith.constant 0 : index
      %c0_22 = arith.constant 0 : index
      %35 = vector.load %arg6[%c0_21, %c0_22] : memref<8x128xf32, #tpu.memory_space<vmem>>, vector<8x128xf32>
      %36 = vector.shape_cast %35 : vector<8x128xf32> to vector<1x8x128xf32>
      %cst_23 = arith.constant dense<0.000000e+00> : vector<1xf32>
      %37 = vector.multi_reduction <add>, %36, %cst_23 [1, 2] : vector<1x8x128xf32> to vector<1xf32>
      %38 = vector.shape_cast %37 : vector<1xf32> to vector<1x1x1xf32>
      %39 = vector.extract %38[0, 0, 0] : f32 from vector<1x1x1xf32>
      %40 = arith.addf %34, %39 : f32
      %cst_24 = arith.constant 0.00130208337 : f32
      %41 = arith.mulf %40, %cst_24 : f32
      %c0_25 = arith.constant 0 : index
      %c0_26 = arith.constant 0 : index
      %42 = memref.load %arg4[%c0_25, %c0_26] : memref<1x1xf32, #tpu.memory_space<smem>>
      memref.store %41, %arg4[%c0_25, %c0_26] : memref<1x1xf32, #tpu.memory_space<smem>>
    } else {
    }
    return
  }
  func.func @transform_0(%arg0: i32) -> (i32, i32) {
    %c0_i32 = arith.constant 0 : i32
    %c0_i32_0 = arith.constant 0 : i32
    return %arg0, %c0_i32 : i32, i32
  }
  func.func @transform_1(%arg0: i32) -> (i32, i32) {
    %c0_i32 = arith.constant 0 : i32
    %c0_i32_0 = arith.constant 0 : i32
    return %arg0, %c0_i32 : i32, i32
  }
  func.func @transform_2(%arg0: i32) -> (i32, i32) {
    %c0_i32 = arith.constant 0 : i32
    %c0_i32_0 = arith.constant 0 : i32
    return %arg0, %c0_i32 : i32, i32
  }
  func.func @transform_3(%arg0: i32) -> (i32, i32) {
    %c0_i32 = arith.constant 0 : i32
    %c0_i32_0 = arith.constant 0 : i32
    %c0_i32_1 = arith.constant 0 : i32
    return %c0_i32, %c0_i32_0 : i32, i32
  }
}

</mosaic_0001>

<bundles_post_ra>
// kernel: _mse_loss_jit.1
= control target key start
LH: loop header
LB: loop body
LE: loop exit
PB: predicated region body
PF: predicated region fallthrough
CT: control target
= control target key end

     0   :  { %v23_v1 = vlaneseq  ;;  %s142_s0 = inlined_call_operand.vmem [shape: f32[6,128], index: 0, kind: input, shape index: {}]   ;;  %s143_s1 = inlined_call_operand.vmem [shape: f32[6,128], index: 1, kind: input, shape index: {}]   ;;  %s144_s2 = inlined_call_operand.vmem [shape: f32[6,128], index: 2, kind: input, shape index: {}]   ;;  %s145_s3 = inlined_call_operand.hbm [shape: f32[1,1], index: 3, kind: output, shape index: {}]  }
   0x1   :  { %v21_v0 = vld [vmem:[%s144_s2] sm:$0xff] }
   0x2   :  { %v28_v2 = vld [vmem:[%s142_s0] sm:$0xff] }
   0x3   :  { %v35_v3 = vld [vmem:[%s143_s1] sm:$0xff]  ;;  %v29_v4 = vsub.f32 %v28_v2, %v21_v0 }
   0x4   :  { %v36_v5 = vsub.f32 %v35_v3, %v21_v0 }
   0x5   :  { %8 = vsyncpa [#allocation5], 0  ;;  %v24_v6 = vshrl.u32 %v23_v1, 7  ;;  %v30_v7 = vmul.f32 %v29_v4, %v29_v4  ;;  %s88_s21 = scalar_lea.hbm %s145_s3, 16 }
   0x6   :  { %v37_v8 = vmul.f32 %v36_v5, %v36_v5  ;;  %p89_p0 = scmp.ne.s32.totalorder %s145_s3, %s88_s21  ;;  %p92_p1 = scmp.lt.u32.totalorder %s88_s21, %s145_s3 }
   0x7   :  { %vm27_vm0 = vcmp.lt.s32.totalorder %v24_v6, 6 }
   0x8   :  { %v31_v9 = vsel %vm27_vm0, %v30_v7, 0.0  ;;  %v38_v10 = vsel %vm27_vm0, %v37_v8, 0.0  ;;  %p94_p2 = pnand %p92_p1, %p89_p0 }
   0x9   :  { %46 = vadd.xlane.f32.xlu0 %v31_v9 }
   0xd   :  { %57 = vadd.xlane.f32.xlu0 %v38_v10 }
  0x96   :  { %v47_v11 = vpop.xlane.xlu0 %46 }
  0x97   :  { %v48_v12 = vrot.slane %v47_v11, 4 }
  0x99   :  { %v49_v13 = vadd.f32 %v48_v12, %v47_v11 }
  0x9a   :  { %v58_v14 = vpop.xlane.xlu0 %57 }
  0x9b   :  { %v50_v15 = vrot.slane %v49_v13, 2  ;;  %v59_v16 = vrot.slane %v58_v14, 4 }
  0x9d   :  { %v60_v17 = vadd.f32 %v59_v16, %v58_v14  ;;  %v51_v18 = vadd.f32 %v50_v15, %v49_v13 }
  0x9f   :  { %v61_v19 = vrot.slane %v60_v17, 2  ;;  %v52_v20 = vrot.slane %v51_v18, 1 }
  0xa1   :  { %v62_v21 = vadd.f32 %v61_v19, %v60_v17  ;;  %v53_v22 = vadd.f32 %v52_v20, %v51_v18 }
  0xa3   :  { %83 = vpush %v53_v22  ;;  %v63_v23 = vrot.slane %v62_v21, 1 }
  0xa5   :  { %v64_v24 = vadd.f32 %v63_v23, %v62_v21 }
  0xa7   :  { %85 = vpush %v64_v24 }
  0xd4   :  { %s84_s0 = spop %83 }
  0xd8   :  { %s86_s1 = spop %85 }
  0xd9   :  { %s66_s2 = sadd.f32 %s86_s1, %s84_s0 }
  0xdb   :  { %s67_s18 = smul.f32 0.0013020834, %s66_s2 }
  0xdd   :  { %69 = sst [smem:[#allocation4]] %s67_s18 }
  0xde   :  { %97 = shalt.err (!%p94_p2)
}
  0xdf   :  { %s100_s26 = smov [#allocation4]  }
  0xe0   :  { %77 = dma.smem_to_hbm %s100_s26, 16, %s145_s3, [#allocation5]  }
  0xe1   :  { %98 = dma.done.wait [#allocation5], 16  }
  0xe2   :  { %99 = vsyncadd [#allocation5], 4294967280 }
  0xe3   :  { %81 = sfence }
  0xe4   :  { %82 = vsyncpa [#allocation5], 1 }

</bundles_post_ra>
